<compile_context>
chip_gen: v6e
topology: v6e:2x2x1
jax: 0.10.0
libtpu: 0.0.40
codegen_flags: <defaults>
</compile_context>

<pallas_src>
import functools

import jax
import jax.numpy as jnp
from jax.experimental import pallas as pl
from jax.experimental.pallas import tpu as pltpu

HIDDEN = 128  # fixed by the module definition: Linear(in_dim, 128)
VMEM_LIMIT = 48 * 1024 * 1024          # safe on v5e/v6e/v7x
FUSE_BUDGET = 40 * 1024 * 1024         # leave headroom below the VMEM limit


def _round_up(a, b):
    return (a + b - 1) // b * b


def _adcls_kernel_fused(x_ref, w1_ref, b1_ref, w2_ref, b2_ref, o_ref):
    """Single-step fused MLP head: out = sigmoid(relu(x @ W1 + b1) @ W2 + b2).

    x is cast to bf16 per-tile (MXU-native operands, f32 accumulation);
    W1 arrives already in bf16 and stays resident in VMEM.
    """
    h = jnp.dot(x_ref[...].astype(jnp.bfloat16), w1_ref[...],
                preferred_element_type=jnp.float32)
    h = jnp.maximum(h + b1_ref[...], 0.0)                       # ReLU
    logits = jnp.dot(h, w2_ref[...],
                     preferred_element_type=jnp.float32) + b2_ref[...]
    o_ref[...] = jax.nn.sigmoid(logits).astype(o_ref.dtype)     # Sigmoid


def _adcls_kernel_tiled(x_ref, w1_ref, b1_ref, w2_ref, b2_ref, o_ref, h_acc,
                        *, nk, tk):
    """K-tiled fallback for very large in_dim. W1 is resident (full K) in VMEM;
    the per-step K slice is taken in-kernel with pl.ds."""
    k = pl.program_id(1)

    @pl.when(k == 0)
    def _():
        # Seed the accumulator with b1 so the epilogue does not need the add.
        h_acc[...] = jnp.broadcast_to(b1_ref[...], h_acc.shape).astype(jnp.float32)

    koff = pl.multiple_of(k * tk, tk)
    w1_blk = w1_ref[pl.ds(koff, tk), :]                          # bf16, resident
    h_acc[...] += jnp.dot(x_ref[...].astype(jnp.bfloat16), w1_blk,
                          preferred_element_type=jnp.float32)

    @pl.when(k == nk - 1)
    def _():
        h = jnp.maximum(h_acc[...], 0.0)                         # ReLU
        logits = jnp.dot(h, w2_ref[...],
                         preferred_element_type=jnp.float32) + b2_ref[...]
        o_ref[...] = jax.nn.sigmoid(logits).astype(o_ref.dtype)  # Sigmoid


def adcls_head_forward(x, w1, b1, w2, b2, *, tm=512, tk=2048):
    """x: (..., in_dim); w1: (in_dim, 128); b1: (128,);
       w2: (128, out_dim); b2: (out_dim,)  ->  (..., out_dim)."""
    in_dim = x.shape[-1]
    out_dim = w2.shape[1]
    assert w1.shape == (in_dim, HIDDEN) and w2.shape[0] == HIDDEN
    lead_shape = x.shape[:-1]

    xf = x.reshape(-1, in_dim)          # keep incoming dtype: no upcast pass
    M = xf.shape[0]
    out_dtype = x.dtype

    # m-tiling: multiple of 8, capped at `tm`, and small enough that there are
    # >= 2 m-blocks when possible (so v7x's two TensorCores both get work).
    tm_eff = min(tm, max(8, _round_up(pl.cdiv(M, 2), 8)))
    nm = pl.cdiv(M, tm_eff)

    # Small params: W1 -> bf16 once (MXU-native, fetched once into VMEM);
    # biases / W2 stay f32 (tiny, second matmul kept in f32).
    w1b = w1.astype(jnp.bfloat16)
    b1r = b1.astype(jnp.float32).reshape(1, HIDDEN)
    w2r = w2.astype(jnp.float32)
    b2r = b2.astype(jnp.float32).reshape(1, out_dim)

    # Fast path: whole K in one grid step if the double-buffered x tile plus
    # the resident W1 fit comfortably in VMEM (true for in_dim ~ a few K).
    x_tile_bytes = tm_eff * in_dim * xf.dtype.itemsize
    w1_bytes = in_dim * HIDDEN * 2
    fuse_k = (2 * x_tile_bytes + w1_bytes) <= FUSE_BUDGET

    if fuse_k:
        out = pl.pallas_call(
            _adcls_kernel_fused,
            out_shape=jax.ShapeDtypeStruct((M, out_dim), out_dtype),
            grid_spec=pltpu.PrefetchScalarGridSpec(
                num_scalar_prefetch=0,
                grid=(nm,),
                in_specs=[
                    pl.BlockSpec((tm_eff, in_dim), lambda m: (m, 0)),   # x tile
                    pl.BlockSpec((in_dim, HIDDEN), lambda m: (0, 0)),   # W1 (resident)
                    pl.BlockSpec((1, HIDDEN), lambda m: (0, 0)),        # b1
                    pl.BlockSpec((HIDDEN, out_dim), lambda m: (0, 0)),  # W2
                    pl.BlockSpec((1, out_dim), lambda m: (0, 0)),       # b2
                ],
                out_specs=pl.BlockSpec((tm_eff, out_dim), lambda m: (m, 0)),
            ),
            compiler_params=pltpu.CompilerParams(
                dimension_semantics=("parallel",),
                vmem_limit_bytes=VMEM_LIMIT,
            ),
        )(xf, w1b, b1r, w2r, b2r)
    else:
        # K-tiled fallback. Zero-pad K (both x and W1, consistently) only when
        # in_dim is not divisible by the K tile — OOB K reads are unsafe.
        tk_eff = tk
        Kp = _round_up(in_dim, tk_eff)
        if Kp != in_dim:
            xf = jnp.pad(xf, ((0, 0), (0, Kp - in_dim)))
            w1b = jnp.pad(w1b, ((0, Kp - in_dim), (0, 0)))
        nk = Kp // tk_eff

        out = pl.pallas_call(
            functools.partial(_adcls_kernel_tiled, nk=nk, tk=tk_eff),
            out_shape=jax.ShapeDtypeStruct((M, out_dim), out_dtype),
            grid_spec=pltpu.PrefetchScalarGridSpec(
                num_scalar_prefetch=0,
                grid=(nm, nk),                        # reduction axis innermost
                in_specs=[
                    pl.BlockSpec((tm_eff, tk_eff), lambda m, k: (m, k)),  # x tile
                    pl.BlockSpec((Kp, HIDDEN), lambda m, k: (0, 0)),      # W1 resident
                    pl.BlockSpec((1, HIDDEN), lambda m, k: (0, 0)),       # b1
                    pl.BlockSpec((HIDDEN, out_dim), lambda m, k: (0, 0)), # W2
                    pl.BlockSpec((1, out_dim), lambda m, k: (0, 0)),      # b2
                ],
                out_specs=pl.BlockSpec((tm_eff, out_dim), lambda m, k: (m, 0)),
                scratch_shapes=[pltpu.VMEM((tm_eff, HIDDEN), jnp.float32)],
            ),
            compiler_params=pltpu.CompilerParams(
                dimension_semantics=("parallel", "arbitrary"),
                vmem_limit_bytes=VMEM_LIMIT,
            ),
        )(xf, w1b, b1r, w2r, b2r)

    return out.reshape(*lead_shape, out_dim)


if __name__ == "__main__":
    key = jax.random.PRNGKey(0)
    k1, k2, k3, k4, k5 = jax.random.split(key, 5)

    # Small shapes consistent with the module's use in FadNet: ADCLS_head(2048, 1)
    # applied to per-frame features (batch=2, seq=8).
    in_dim, out_dim = 2048, 1
    b, t = 2, 8

    x = jax.random.normal(k1, (b, t, in_dim), jnp.float32)
    w1 = jax.random.normal(k2, (in_dim, HIDDEN), jnp.float32) * 0.02
    b1 = jax.random.normal(k3, (HIDDEN,), jnp.float32) * 0.02
    w2 = jax.random.normal(k4, (HIDDEN, out_dim), jnp.float32) * 0.02
    b2 = jax.random.normal(k5, (out_dim,), jnp.float32) * 0.02

    fwd = jax.jit(adcls_head_forward)
    out = fwd(x, w1, b1, w2, b2)
    jax.block_until_ready(out)

    # Pure-JAX f32 reference of the torch module. The kernel feeds the first
    # matmul bf16 operands (f32 accumulation), so tolerance is loosened vs.
    # the previous strictly-f32 version.
    ref = jax.nn.sigmoid(jnp.maximum(x @ w1 + b1, 0.0) @ w2 + b2)

    assert out.shape == (b, t, out_dim), out.shape
    assert jnp.all(jnp.isfinite(out))
    max_err = float(jnp.max(jnp.abs(out - ref)))
    assert jnp.allclose(out, ref, atol=5e-3, rtol=1e-3), max_err
    print("KERNEL_OK")
</pallas_src>

<mosaic_0001>
module attributes {stable_mosaic.version = 11 : i64} {
  func.func @_adcls_kernel_fused(%arg0: i32, %arg1: memref<8x2048xf32, #tpu.memory_space<vmem>>, %arg2: memref<2048x128xbf16, #tpu.memory_space<vmem>>, %arg3: memref<1x128xf32, #tpu.memory_space<vmem>>, %arg4: memref<128x1xf32, #tpu.memory_space<vmem>>, %arg5: memref<1x1xf32, #tpu.memory_space<vmem>>, %arg6: memref<8x1xf32, #tpu.memory_space<vmem>>) attributes {dimension_semantics = [#tpu.dimension_semantics<parallel>], iteration_bounds = array<i64: 2>, scalar_prefetch = 0 : i64, scratch_operands = 0 : i64, tpu.core_type = #tpu.core_type<tc>, window_params = [{transform_indices = @transform_0, window_bounds = array<i64: 8, 2048>}, {pipeline_mode = #tpu.pipeline_mode<synchronous>, transform_indices = @transform_1, window_bounds = array<i64: 2048, 128>}, {pipeline_mode = #tpu.pipeline_mode<synchronous>, transform_indices = @transform_2, window_bounds = array<i64: 1, 128>}, {pipeline_mode = #tpu.pipeline_mode<synchronous>, transform_indices = @transform_3, window_bounds = array<i64: 128, 1>}, {pipeline_mode = #tpu.pipeline_mode<synchronous>, transform_indices = @transform_4, window_bounds = array<i64: 1, 1>}, {transform_indices = @transform_5, window_bounds = array<i64: 8, 1>}]} {
    %c0 = arith.constant 0 : index
    %c0_0 = arith.constant 0 : index
    %0 = vector.load %arg1[%c0, %c0_0] : memref<8x2048xf32, #tpu.memory_space<vmem>>, vector<8x2048xf32>
    %1 = arith.truncf %0 : vector<8x2048xf32> to vector<8x2048xbf16>
    %c0_1 = arith.constant 0 : index
    %c0_2 = arith.constant 0 : index
    %2 = vector.load %arg2[%c0_1, %c0_2] : memref<2048x128xbf16, #tpu.memory_space<vmem>>, vector<2048x128xbf16>
    %cst = arith.constant dense<0.000000e+00> : vector<8x128xf32>
    %3 = tpu.matmul %1, %2, %cst {dimension_numbers = #tpu.dot_dimension_numbers<[1], [0], [0], [1], [0, 0, 1, 1], [], []>} : vector<8x2048xbf16>, vector<2048x128xbf16>, vector<8x128xf32> -> vector<8x128xf32>
    %c0_3 = arith.constant 0 : index
    %c0_4 = arith.constant 0 : index
    %4 = vector.load %arg3[%c0_3, %c0_4] : memref<1x128xf32, #tpu.memory_space<vmem>>, vector<1x128xf32>
    %5 = vector.broadcast %4 : vector<1x128xf32> to vector<8x128xf32>
    %6 = arith.addf %3, %5 : vector<8x128xf32>
    %cst_5 = arith.constant 0.000000e+00 : f32
    %7 = vector.broadcast %cst_5 : f32 to vector<8x128xf32>
    %8 = arith.maximumf %6, %7 : vector<8x128xf32>
    %c0_6 = arith.constant 0 : index
    %c0_7 = arith.constant 0 : index
    %9 = vector.load %arg4[%c0_6, %c0_7] : memref<128x1xf32, #tpu.memory_space<vmem>>, vector<128x1xf32>
    %cst_8 = arith.constant dense<0.000000e+00> : vector<8x1xf32>
    %10 = tpu.matmul %8, %9, %cst_8 {dimension_numbers = #tpu.dot_dimension_numbers<[1], [0], [0], [1], [0, 0, 1, 1], [], []>} : vector<8x128xf32>, vector<128x1xf32>, vector<8x1xf32> -> vector<8x1xf32>
    %c0_9 = arith.constant 0 : index
    %c0_10 = arith.constant 0 : index
    %11 = vector.load %arg5[%c0_9, %c0_10] : memref<1x1xf32, #tpu.memory_space<vmem>>, vector<1x1xf32>
    %12 = vector.broadcast %11 : vector<1x1xf32> to vector<8x1xf32>
    %13 = arith.addf %10, %12 : vector<8x1xf32>
    %14 = arith.negf %13 : vector<8x1xf32>
    %15 = math.exp %14 : vector<8x1xf32>
    %cst_11 = arith.constant 1.000000e+00 : f32
    %16 = vector.broadcast %cst_11 : f32 to vector<8x1xf32>
    %17 = arith.addf %16, %15 : vector<8x1xf32>
    %18 = arith.divf %16, %17 : vector<8x1xf32>
    %c0_12 = arith.constant 0 : index
    %c0_13 = arith.constant 0 : index
    %19 = vector.load %arg6[%c0_12, %c0_13] : memref<8x1xf32, #tpu.memory_space<vmem>>, vector<8x1xf32>
    tpu.vector_store %arg6[%c0_12, %c0_13], %18 {strides = array<i32>} : memref<8x1xf32, #tpu.memory_space<vmem>>, vector<8x1xf32>,
    return
  }
  func.func @transform_0(%arg0: i32) -> (i32, i32) {
    %c0_i32 = arith.constant 0 : i32
    %c0_i32_0 = arith.constant 0 : i32
    return %arg0, %c0_i32 : i32, i32
  }
  func.func @transform_1(%arg0: i32) -> (i32, i32) {
    %c0_i32 = arith.constant 0 : i32
    %c0_i32_0 = arith.constant 0 : i32
    %c0_i32_1 = arith.constant 0 : i32
    return %c0_i32, %c0_i32_0 : i32, i32
  }
  func.func @transform_2(%arg0: i32) -> (i32, i32) {
    %c0_i32 = arith.constant 0 : i32
    %c0_i32_0 = arith.constant 0 : i32
    %c0_i32_1 = arith.constant 0 : i32
    return %c0_i32, %c0_i32_0 : i32, i32
  }
  func.func @transform_3(%arg0: i32) -> (i32, i32) {
    %c0_i32 = arith.constant 0 : i32
    %c0_i32_0 = arith.constant 0 : i32
    %c0_i32_1 = arith.constant 0 : i32
    return %c0_i32, %c0_i32_0 : i32, i32
  }
  func.func @transform_4(%arg0: i32) -> (i32, i32) {
    %c0_i32 = arith.constant 0 : i32
    %c0_i32_0 = arith.constant 0 : i32
    %c0_i32_1 = arith.constant 0 : i32
    return %c0_i32, %c0_i32_0 : i32, i32
  }
  func.func @transform_5(%arg0: i32) -> (i32, i32) {
    %c0_i32 = arith.constant 0 : i32
    %c0_i32_0 = arith.constant 0 : i32
    return %arg0, %c0_i32 : i32, i32
  }
}

</mosaic_0001>

<bundles_post_ra>
// kernel: adcls_head_forward.1
= control target key start
LH: loop header
LB: loop body
LE: loop exit
PB: predicated region body
PF: predicated region fallthrough
CT: control target
= control target key end

     0   :  { %s2319_s20 = smov 0   ;;  %s2797_s0 = inlined_call_operand.vmem [shape: f32[16,2048], index: 0, kind: input, shape index: {}]   ;;  %s2798_s1 = inlined_call_operand.vmem [shape: bf16[2048,128], index: 1, kind: input, shape index: {}]   ;;  %s2799_s2 = inlined_call_operand.vmem [shape: f32[1,128], index: 2, kind: input, shape index: {}]   ;;  %s2800_s3 = inlined_call_operand.vmem [shape: f32[128,1], index: 3, kind: input, shape index: {}]   ;;  %s2801_s4 = inlined_call_operand.<no memory space> [shape: f32[1,1], index: 4, kind: input, shape index: {}]   ;;  %s2802_s5 = inlined_call_operand.vmem [shape: f32[16,1], index: 5, kind: output, shape index: {}]  }
   0x1   :  { %v10_v0 = vstv %s2801_s4 }
   0x2   :  { %11 = vst [vmem:[#allocation2] sm:$0x1] %v10_v0 }
   0x3 LB: > { %s1764_s21 = sadd.s32 4294967295, %s2282_s20   ;;  %p1768_p0 = scmp.ge.s32.totalorder %s2282_s20, 1  ;;  %s2282_s20 = sphi %s2319_s20, %s17_s20  }
   0x4   : > { %p189_p1 = scmp.lt.s32.totalorder %s2282_s20, 3 }
   0x6   : > { %p190_p2 = pnand %p1768_p0, %p189_p1 }
   0x7   : > { %p216_p3 = scmp.lt.s32.totalorder (!%p190_p2), %s1764_s21, 1 }
   0x8   : > { %193 = sbr.rel (%p190_p2) target bundleno = 574 (0x23e), region = 40 }
   0xd   : > { %v2144_v1 = vld [vmem:[%s2798_s1 + $0x78] sm:$0xff]   ;;  %v2148_v5 = vld [vmem:[%s2798_s1 + $0x70] sm:$0xff]   ;;  %v2152_v9 = vld [vmem:[%s2798_s1 + $0x68] sm:$0xff]   ;;  %s2804_s21 = smov (!%p216_p3, %s1764_s21), 1  ;;  %vm2285_vm0 = vmmov 0   ;;  %vm1709_vm1 = vcmask 7168  }
   0xe   : > { %v2145_v2 = vld [vmem:[%s2798_s1 + $0xf8] sm:$0xff]   ;;  %1906 = vmatprep.subr.bf16.mxu0 %v2144_v1  ;;  %v2149_v6 = vld [vmem:[%s2798_s1 + $0xf0] sm:$0xff]   ;;  %v2153_v10 = vld [vmem:[%s2798_s1 + $0xe8] sm:$0xff]   ;;  %s1905_s27 = sshll.u32 %s2804_s21, 7  ;;  %s1771_s9 = sshll.u32 %s2804_s21, 3 }
   0xf   : > { %v2146_v3 = vld [vmem:[%s2798_s1 + $0x38] sm:$0xff]   ;;  %1928 = vmatprep.subr.bf16.mxu1 %v2145_v2  ;;  %v2150_v7 = vld [vmem:[%s2798_s1 + $0x30] sm:$0xff]   ;;  %v2154_v11 = vld [vmem:[%s2798_s1 + $0x28] sm:$0xff]   ;;  %s2427_s11 = scalar_lea.vmem %s2797_s0, %s1905_s27  ;;  %s224_s13 = scalar_lea.vmem %s2802_s5, %s1771_s9 }
  0x10   : > { %v2147_v4 = vld [vmem:[%s2798_s1 + $0xb8] sm:$0xff]   ;;  %1907 = vmatpush3.bf16.msra.mxu0 %v2146_v3  ;;  %v2151_v8 = vld [vmem:[%s2798_s1 + $0xb0] sm:$0xff]   ;;  %v2155_v12 = vld [vmem:[%s2798_s1 + $0xa8] sm:$0xff]  }
  0x11   : > { %1929 = vmatpush3.bf16.msra.mxu1 %v2147_v4  ;;  %1908 = vmatprep.subr.bf16.mxu0 %v2148_v5  ;;  %v2156_v13 = vld [vmem:[%s2798_s1 + $0x60] sm:$0xff]   ;;  %v2160_v17 = vld [vmem:[%s2798_s1 + $0x58] sm:$0xff]   ;;  %v2164_v21 = vld [vmem:[%s2798_s1 + $0x50] sm:$0xff]  }
  0x12   : > { %1930 = vmatprep.subr.bf16.mxu1 %v2149_v6  ;;  %v2157_v14 = vld [vmem:[%s2798_s1 + $0xe0] sm:$0xff]   ;;  %v2161_v18 = vld [vmem:[%s2798_s1 + $0xd8] sm:$0xff]   ;;  %v2165_v22 = vld [vmem:[%s2798_s1 + $0xd0] sm:$0xff]  }
  0x13   : > { %v2158_v15 = vld [vmem:[%s2798_s1 + $0x20] sm:$0xff]   ;;  %v2162_v19 = vld [vmem:[%s2798_s1 + $0x18] sm:$0xff]   ;;  %v2166_v23 = vld [vmem:[%s2798_s1 + $0x10] sm:$0xff]  }
  0x14   : > { %1909 = vmatpush3.bf16.msra.mxu0 %v2150_v7  ;;  %v2159_v16 = vld [vmem:[%s2798_s1 + $0xa0] sm:$0xff]   ;;  %v2163_v20 = vld [vmem:[%s2798_s1 + $0x98] sm:$0xff]   ;;  %v2167_v24 = vld [vmem:[%s2798_s1 + $0x90] sm:$0xff]  }
  0x15   : > { %1931 = vmatpush3.bf16.msra.mxu1 %v2151_v8  ;;  %1910 = vmatprep.subr.bf16.mxu0 %v2152_v9  ;;  %v2168_v25 = vld [vmem:[%s2798_s1 + $0x48] sm:$0xff]   ;;  %v2172_v29 = vld [vmem:[%s2798_s1 + $0x40] sm:$0xff]   ;;  %v229_v34 = vld [vmem:[%s2427_s11 + $0x18] sm:$0xff] }
  0x16   : > { %1932 = vmatprep.subr.bf16.mxu1 %v2153_v10  ;;  %v2169_v26 = vld [vmem:[%s2798_s1 + $0xc8] sm:$0xff]   ;;  %v2173_v30 = vld [vmem:[%s2798_s1 + $0xc0] sm:$0xff]   ;;  %v245_v37 = vpack.c.bf16 %v229_v34, %v229_v34  ;;  %v228_v39 = vld [vmem:[%s2427_s11 + $0x10] sm:$0xff] }
  0x17   : > { %v2170_v27 = vld [vmem:[%s2798_s1 + $0x8] sm:$0xff]   ;;  %v2174_v31 = vld [vmem:[%s2798_s1] sm:$0xff]   ;;  %v244_v40 = vpack.c.bf16 %v228_v39, %v228_v39  ;;  %v2176_v41 = vld [vmem:[%s2798_s1 + $0x178] sm:$0xff]  }
  0x18   : > { %1911 = vmatpush3.bf16.msra.mxu0 %v2154_v11  ;;  %v2171_v28 = vld [vmem:[%s2798_s1 + $0x88] sm:$0xff]   ;;  %v2175_v32 = vld [vmem:[%s2798_s1 + $0x80] sm:$0xff]   ;;  %1361 = vmatprep.mubr.bf16.mxu1 %v245_v37  ;;  %v2177_v42 = vld [vmem:[%s2798_s1 + $0x1f8] sm:$0xff]  }
  0x19   : > { %1933 = vmatpush3.bf16.msra.mxu1 %v2155_v12  ;;  %1912 = vmatprep.subr.bf16.mxu0 %v2156_v13  ;;  %v227_v33 = vld [vmem:[%s2427_s11 + $0x8] sm:$0xff]  ;;  %v226_v35 = vld [vmem:[%s2427_s11] sm:$0xff]  ;;  %v2178_v43 = vld [vmem:[%s2798_s1 + $0x138] sm:$0xff]  }
  0x1a   : > { %1934 = vmatprep.subr.bf16.mxu1 %v2157_v14  ;;  %v243_v36 = vpack.c.bf16 %v227_v33, %v227_v33  ;;  %v242_v38 = vpack.c.bf16 %v226_v35, %v226_v35  ;;  %v2179_v44 = vld [vmem:[%s2798_s1 + $0x1b8] sm:$0xff]   ;;  %v2180_v45 = vld [vmem:[%s2798_s1 + $0x170] sm:$0xff]   ;;  %v2184_v49 = vld [vmem:[%s2798_s1 + $0x168] sm:$0xff]  }
  0x1b   : > { %v2181_v46 = vld [vmem:[%s2798_s1 + $0x1f0] sm:$0xff]   ;;  %v2185_v50 = vld [vmem:[%s2798_s1 + $0x1e8] sm:$0xff]   ;;  %v2188_v53 = vld [vmem:[%s2798_s1 + $0x160] sm:$0xff]  }
  0x1c   : > { %1913 = vmatpush3.bf16.msra.mxu0 %v2158_v15  ;;  %1321 = vmatprep.mubr.bf16.mxu0 %v243_v36  ;;  %v2182_v47 = vld [vmem:[%s2798_s1 + $0x130] sm:$0xff]   ;;  %v2186_v51 = vld [vmem:[%s2798_s1 + $0x128] sm:$0xff]   ;;  %v2189_v54 = vld [vmem:[%s2798_s1 + $0x1e0] sm:$0xff]  }
  0x1d   : > { %1935 = vmatpush3.bf16.msra.mxu1 %v2159_v16  ;;  %1914 = vmatprep.subr.bf16.mxu0 %v2160_v17  ;;  %v2183_v48 = vld [vmem:[%s2798_s1 + $0x1b0] sm:$0xff]   ;;  %v2187_v52 = vld [vmem:[%s2798_s1 + $0x1a8] sm:$0xff]   ;;  %v2190_v55 = vld [vmem:[%s2798_s1 + $0x120] sm:$0xff]  }
  0x1e   : > { %1936 = vmatprep.subr.bf16.mxu1 %v2161_v18  ;;  %v2191_v56 = vld [vmem:[%s2798_s1 + $0x1a0] sm:$0xff]   ;;  %v2192_v57 = vld [vmem:[%s2798_s1 + $0x158] sm:$0xff]   ;;  %v2196_v61 = vld [vmem:[%s2798_s1 + $0x150] sm:$0xff]  }
  0x1f   : > { %v2193_v58 = vld [vmem:[%s2798_s1 + $0x1d8] sm:$0xff]   ;;  %v2197_v62 = vld [vmem:[%s2798_s1 + $0x1d0] sm:$0xff]   ;;  %v2200_v1 = vld [vmem:[%s2798_s1 + $0x148] sm:$0xff]  }
  0x20   : > { %1915 = vmatpush3.bf16.msra.mxu0 %v2162_v19  ;;  %v2194_v59 = vld [vmem:[%s2798_s1 + $0x118] sm:$0xff]   ;;  %v2198_v63 = vld [vmem:[%s2798_s1 + $0x110] sm:$0xff]   ;;  %v2201_v2 = vld [vmem:[%s2798_s1 + $0x1c8] sm:$0xff]  }
  0x21   : > { %1937 = vmatpush3.bf16.msra.mxu1 %v2163_v20  ;;  %1916 = vmatprep.subr.bf16.mxu0 %v2164_v21  ;;  %v2195_v60 = vld [vmem:[%s2798_s1 + $0x198] sm:$0xff]   ;;  %v2199_v0 = vld [vmem:[%s2798_s1 + $0x190] sm:$0xff]   ;;  %v2202_v3 = vld [vmem:[%s2798_s1 + $0x108] sm:$0xff]  }
  0x22   : > { %1938 = vmatprep.subr.bf16.mxu1 %v2165_v22  ;;  %v2203_v4 = vld [vmem:[%s2798_s1 + $0x188] sm:$0xff]   ;;  %v2204_v5 = vld [vmem:[%s2798_s1 + $0x140] sm:$0xff]   ;;  %v233_v10 = vld [vmem:[%s2427_s11 + $0x38] sm:$0xff] }
  0x23   : > { %v2205_v6 = vld [vmem:[%s2798_s1 + $0x1c0] sm:$0xff]   ;;  %v231_v9 = vld [vmem:[%s2427_s11 + $0x28] sm:$0xff]  ;;  %v249_v12 = vpack.c.bf16 %v233_v10, %v233_v10  ;;  %v232_v14 = vld [vmem:[%s2427_s11 + $0x30] sm:$0xff] }
  0x24   : > { %1917 = vmatpush3.bf16.msra.mxu0 %v2166_v23  ;;  %v2206_v7 = vld [vmem:[%s2798_s1 + $0x100] sm:$0xff]   ;;  %v247_v11 = vpack.c.bf16 %v231_v9, %v231_v9  ;;  %v248_v16 = vpack.c.bf16 %v232_v14, %v232_v14  ;;  %v2208_v17 = vld [vmem:[%s2798_s1 + $0x278] sm:$0xff]   ;;  %v2212_v21 = vld [vmem:[%s2798_s1 + $0x270] sm:$0xff]  }
  0x25   : > { %1939 = vmatpush3.bf16.msra.mxu1 %v2167_v24  ;;  %1918 = vmatprep.subr.bf16.mxu0 %v2168_v25  ;;  %v2207_v8 = vld [vmem:[%s2798_s1 + $0x180] sm:$0xff]   ;;  %v2209_v18 = vld [vmem:[%s2798_s1 + $0x2f8] sm:$0xff]   ;;  %v2213_v22 = vld [vmem:[%s2798_s1 + $0x2f0] sm:$0xff]  }
  0x26   : > { %1940 = vmatprep.subr.bf16.mxu1 %v2169_v26  ;;  %v230_v13 = vld [vmem:[%s2427_s11 + $0x20] sm:$0xff]  ;;  %v2210_v19 = vld [vmem:[%s2798_s1 + $0x238] sm:$0xff]   ;;  %v2214_v23 = vld [vmem:[%s2798_s1 + $0x230] sm:$0xff]  }
  0x27   : > { %v246_v15 = vpack.c.bf16 %v230_v13, %v230_v13  ;;  %v2211_v20 = vld [vmem:[%s2798_s1 + $0x2b8] sm:$0xff]   ;;  %v2215_v24 = vld [vmem:[%s2798_s1 + $0x2b0] sm:$0xff]   ;;  %v2216_v25 = vld [vmem:[%s2798_s1 + $0x268] sm:$0xff]  }
  0x28   : > { %1919 = vmatpush3.bf16.msra.mxu0 %v2170_v27  ;;  %v2217_v26 = vld [vmem:[%s2798_s1 + $0x2e8] sm:$0xff]   ;;  %v2224_v33 = vld [vmem:[%s2798_s1 + $0x258] sm:$0xff]   ;;  %v2228_v37 = vld [vmem:[%s2798_s1 + $0x250] sm:$0xff]  }
  0x29   : > { %1941 = vmatpush3.bf16.msra.mxu1 %v2171_v28  ;;  %1920 = vmatprep.subr.bf16.mxu0 %v2172_v29  ;;  %v2218_v27 = vld [vmem:[%s2798_s1 + $0x228] sm:$0xff]   ;;  %v2220_v29 = vld [vmem:[%s2798_s1 + $0x260] sm:$0xff]   ;;  %v2225_v34 = vld [vmem:[%s2798_s1 + $0x2d8] sm:$0xff]  }
  0x2a   : > { %1942 = vmatprep.subr.bf16.mxu1 %v2173_v30  ;;  %v2219_v28 = vld [vmem:[%s2798_s1 + $0x2a8] sm:$0xff]   ;;  %v2221_v30 = vld [vmem:[%s2798_s1 + $0x2e0] sm:$0xff]   ;;  %v2226_v35 = vld [vmem:[%s2798_s1 + $0x218] sm:$0xff]  }
  0x2b   : > { %v2227_v36 = vld [vmem:[%s2798_s1 + $0x298] sm:$0xff]   ;;  %v2230_v39 = vld [vmem:[%s2798_s1 + $0x210] sm:$0xff]  }
  0x2c   : > { %1921 = vmatpush3.bf16.msra.mxu0 %v2174_v31  ;;  %v2222_v31 = vld [vmem:[%s2798_s1 + $0x220] sm:$0xff]   ;;  %v2256_v9 = vld [vmem:[%s2798_s1 + $0x358] sm:$0xff]   ;;  %v2260_v13 = vld [vmem:[%s2798_s1 + $0x350] sm:$0xff]  }
  0x2d   : > { %1943 = vmatpush3.bf16.msra.mxu1 %v2175_v32  ;;  %1950 = vmatprep.subr.bf16.mxu0 %v2176_v41  ;;  %v2223_v32 = vld [vmem:[%s2798_s1 + $0x2a0] sm:$0xff]   ;;  %v2232_v41 = vld [vmem:[%s2798_s1 + $0x248] sm:$0xff]   ;;  %v2257_v10 = vld [vmem:[%s2798_s1 + $0x3d8] sm:$0xff]  }
  0x2e   : > { %1972 = vmatprep.subr.bf16.mxu1 %v2177_v42  ;;  %v2233_v42 = vld [vmem:[%s2798_s1 + $0x2c8] sm:$0xff]   ;;  %v2261_v14 = vld [vmem:[%s2798_s1 + $0x3d0] sm:$0xff]  }
  0x2f   : > { %1322 = vmatmul.mubr.bf16.vlgmr.msra.gmra.mxu0 %v242_v38  ;;  %v2229_v38 = vld [vmem:[%s2798_s1 + $0x2d0] sm:$0xff]  }
  0x30   : > { %1362 = vmatmul.mubr.bf16.vlgmr.msra.gmra.mxu1 %v244_v40  ;;  %1951 = vmatpush3.bf16.msra.mxu0 %v2178_v43  ;;  %v2231_v40 = vld [vmem:[%s2798_s1 + $0x290] sm:$0xff]   ;;  %v2234_v43 = vld [vmem:[%s2798_s1 + $0x208] sm:$0xff]  }
  0x31   : > { %1973 = vmatpush3.bf16.msra.mxu1 %v2179_v44  ;;  %1952 = vmatprep.subr.bf16.mxu0 %v2180_v45  ;;  %v2235_v44 = vld [vmem:[%s2798_s1 + $0x288] sm:$0xff]   ;;  %v2236_v45 = vld [vmem:[%s2798_s1 + $0x240] sm:$0xff]  }
  0x32   : > { %1974 = vmatprep.subr.bf16.mxu1 %v2181_v46  ;;  %1401 = vmatprep.mubr.bf16.mxu0 %v247_v11  ;;  %v2237_v46 = vld [vmem:[%s2798_s1 + $0x2c0] sm:$0xff]   ;;  %v2258_v11 = vld [vmem:[%s2798_s1 + $0x318] sm:$0xff]  }
  0x33   : > { %1441 = vmatprep.mubr.bf16.mxu1 %v249_v12  ;;  %v2259_v12 = vld [vmem:[%s2798_s1 + $0x398] sm:$0xff]  }
  0x34   : > { %1953 = vmatpush3.bf16.msra.mxu0 %v2182_v47  ;;  %v2238_v47 = vld [vmem:[%s2798_s1 + $0x200] sm:$0xff]  }
  0x35   : > { %1975 = vmatpush3.bf16.msra.mxu1 %v2183_v48  ;;  %1954 = vmatprep.subr.bf16.mxu0 %v2184_v49  ;;  %v2239_v48 = vld [vmem:[%s2798_s1 + $0x280] sm:$0xff]   ;;  %v235_v49 = vld [vmem:[%s2427_s11 + $0x48] sm:$0xff] }
  0x36   : > { %1976 = vmatprep.subr.bf16.mxu1 %v2185_v50  ;;  %v251_v50 = vpack.c.bf16 %v235_v49, %v235_v49  ;;  %v1610_v49 = vld [vmem:[%s2800_s3] sm:$0xff] }
  0x38   : > { %1955 = vmatpush3.bf16.msra.mxu0 %v2186_v51  ;;  %v237_v51 = vld [vmem:[%s2427_s11 + $0x58] sm:$0xff] }
  0x39   : > { %1977 = vmatpush3.bf16.msra.mxu1 %v2187_v52  ;;  %1956 = vmatprep.subr.bf16.mxu0 %v2188_v53  ;;  %v234_v52 = vld [vmem:[%s2427_s11 + $0x40] sm:$0xff]  ;;  %v236_v53 = vld [vmem:[%s2427_s11 + $0x50] sm:$0xff] }
  0x3a   : > { %1978 = vmatprep.subr.bf16.mxu1 %v2189_v54  ;;  %v253_v54 = vpack.c.bf16 %v237_v51, %v237_v51 }
  0x3c   : > { %1957 = vmatpush3.bf16.msra.mxu0 %v2190_v55  ;;  %v250_v55 = vpack.c.bf16 %v234_v52, %v234_v52  ;;  %v1772_v52 = vld [vmem:[%s2799_s2] ss:$0 sm:$0xff] }
  0x3d   : > { %1979 = vmatpush3.bf16.msra.mxu1 %v2191_v56  ;;  %1958 = vmatprep.subr.bf16.mxu0 %v2192_v57  ;;  %v252_v56 = vpack.c.bf16 %v236_v53, %v236_v53  ;;  %v2240_v57 = vld [vmem:[%s2798_s1 + $0x378] sm:$0xff]  }
  0x3e   : > { %1980 = vmatprep.subr.bf16.mxu1 %v2193_v58  ;;  %v2241_v58 = vld [vmem:[%s2798_s1 + $0x3f8] sm:$0xff]  }
  0x40   : > { %1959 = vmatpush3.bf16.msra.mxu0 %v2194_v59  ;;  %v2242_v59 = vld [vmem:[%s2798_s1 + $0x338] sm:$0xff]  }
  0x41   : > { %1981 = vmatpush3.bf16.msra.mxu1 %v2195_v60  ;;  %1960 = vmatprep.subr.bf16.mxu0 %v2196_v61  ;;  %v2243_v60 = vld [vmem:[%s2798_s1 + $0x3b8] sm:$0xff]   ;;  %v2244_v61 = vld [vmem:[%s2798_s1 + $0x370] sm:$0xff]  }
  0x42   : > { %1982 = vmatprep.subr.bf16.mxu1 %v2197_v62  ;;  %v2245_v62 = vld [vmem:[%s2798_s1 + $0x3f0] sm:$0xff]  }
  0x44   : > { %1961 = vmatpush3.bf16.msra.mxu0 %v2198_v63  ;;  %v2246_v63 = vld [vmem:[%s2798_s1 + $0x330] sm:$0xff]  }
  0x45   : > { %1983 = vmatpush3.bf16.msra.mxu1 %v2199_v0  ;;  %1962 = vmatprep.subr.bf16.mxu0 %v2200_v1  ;;  %v2247_v0 = vld [vmem:[%s2798_s1 + $0x3b0] sm:$0xff]   ;;  %v2248_v1 = vld [vmem:[%s2798_s1 + $0x368] sm:$0xff]  }
  0x46   : > { %1984 = vmatprep.subr.bf16.mxu1 %v2201_v2  ;;  %v2249_v2 = vld [vmem:[%s2798_s1 + $0x3e8] sm:$0xff]  }
  0x48   : > { %1963 = vmatpush3.bf16.msra.mxu0 %v2202_v3  ;;  %v2250_v3 = vld [vmem:[%s2798_s1 + $0x328] sm:$0xff]  }
  0x49   : > { %1985 = vmatpush3.bf16.msra.mxu1 %v2203_v4  ;;  %1964 = vmatprep.subr.bf16.mxu0 %v2204_v5  ;;  %v2251_v4 = vld [vmem:[%s2798_s1 + $0x3a8] sm:$0xff]   ;;  %v2252_v5 = vld [vmem:[%s2798_s1 + $0x360] sm:$0xff]  }
  0x4a   : > { %1986 = vmatprep.subr.bf16.mxu1 %v2205_v6  ;;  %v2253_v6 = vld [vmem:[%s2798_s1 + $0x3e0] sm:$0xff]  }
  0x4c   : > { %1965 = vmatpush3.bf16.msra.mxu0 %v2206_v7  ;;  %v2254_v7 = vld [vmem:[%s2798_s1 + $0x320] sm:$0xff]  }
  0x4d   : > { %1987 = vmatpush3.bf16.msra.mxu1 %v2207_v8  ;;  %1994 = vmatprep.subr.bf16.mxu0 %v2208_v17  ;;  %v2255_v8 = vld [vmem:[%s2798_s1 + $0x3a0] sm:$0xff]   ;;  %v2264_v17 = vld [vmem:[%s2798_s1 + $0x348] sm:$0xff]  }
  0x4e   : > { %2016 = vmatprep.subr.bf16.mxu1 %v2209_v18  ;;  %v2265_v18 = vld [vmem:[%s2798_s1 + $0x3c8] sm:$0xff]  }
  0x4f   : > { %1402 = vmatmul.mubr.bf16.vlgmr.msra.gmra.mxu0 %v246_v15  ;;  %v2262_v15 = vld [vmem:[%s2798_s1 + $0x310] sm:$0xff]  }
  0x50   : > { %1442 = vmatmul.mubr.bf16.vlgmr.msra.gmra.mxu1 %v248_v16  ;;  %1995 = vmatpush3.bf16.msra.mxu0 %v2210_v19  ;;  %v2263_v16 = vld [vmem:[%s2798_s1 + $0x390] sm:$0xff]   ;;  %v2266_v19 = vld [vmem:[%s2798_s1 + $0x308] sm:$0xff]  }
  0x51   : > { %2017 = vmatpush3.bf16.msra.mxu1 %v2211_v20  ;;  %1996 = vmatprep.subr.bf16.mxu0 %v2212_v21  ;;  %v2267_v20 = vld [vmem:[%s2798_s1 + $0x388] sm:$0xff]   ;;  %v2268_v21 = vld [vmem:[%s2798_s1 + $0x340] sm:$0xff]  }
  0x52   : > { %2018 = vmatprep.subr.bf16.mxu1 %v2213_v22  ;;  %1481 = vmatprep.mubr.bf16.mxu0 %v251_v50  ;;  %v2269_v22 = vld [vmem:[%s2798_s1 + $0x3c0] sm:$0xff]  }
  0x53   : > { %1521 = vmatprep.mubr.bf16.mxu1 %v253_v54 }
  0x54   : > { %1997 = vmatpush3.bf16.msra.mxu0 %v2214_v23  ;;  %v2270_v23 = vld [vmem:[%s2798_s1 + $0x300] sm:$0xff]  }
  0x55   : > { %2019 = vmatpush3.bf16.msra.mxu1 %v2215_v24  ;;  %1998 = vmatprep.subr.bf16.mxu0 %v2216_v25  ;;  %v2271_v24 = vld [vmem:[%s2798_s1 + $0x380] sm:$0xff]   ;;  %v239_v25 = vld [vmem:[%s2427_s11 + $0x68] sm:$0xff] }
  0x56   : > { %2020 = vmatprep.subr.bf16.mxu1 %v2217_v26  ;;  %v241_v26 = vld [vmem:[%s2427_s11 + $0x78] sm:$0xff] }
  0x58   : > { %1999 = vmatpush3.bf16.msra.mxu0 %v2218_v27  ;;  %v238_v27 = vld [vmem:[%s2427_s11 + $0x60] sm:$0xff] }
  0x59   : > { %2021 = vmatpush3.bf16.msra.mxu1 %v2219_v28  ;;  %2000 = vmatprep.subr.bf16.mxu0 %v2220_v29  ;;  %v255_v28 = vpack.c.bf16 %v239_v25, %v239_v25  ;;  %v257_v29 = vpack.c.bf16 %v241_v26, %v241_v26 }
  0x5a   : > { %2022 = vmatprep.subr.bf16.mxu1 %v2221_v30  ;;  %v254_v30 = vpack.c.bf16 %v238_v27, %v238_v27 }
  0x5c   : > { %2001 = vmatpush3.bf16.msra.mxu0 %v2222_v31  ;;  %v240_v31 = vld [vmem:[%s2427_s11 + $0x70] sm:$0xff] }
  0x5d   : > { %2023 = vmatpush3.bf16.msra.mxu1 %v2223_v32  ;;  %2002 = vmatprep.subr.bf16.mxu0 %v2224_v33  ;;  %v256_v32 = vpack.c.bf16 %v240_v31, %v240_v31  ;;  %v1625_v33 = vld [vmem:[%s2800_s3 + $0x78] sm:$0xff] }
  0x5e   : > { %2024 = vmatprep.subr.bf16.mxu1 %v2225_v34  ;;  %v2284_v34 = vmov 0.0  }
  0x60   : > { %2003 = vmatpush3.bf16.msra.mxu0 %v2226_v35  ;;  %v1624_v35 = vld [vmem:[%s2800_s3 + $0x70] sm:$0xff] }
  0x61   : > { %2025 = vmatpush3.bf16.msra.mxu1 %v2227_v36  ;;  %2004 = vmatprep.subr.bf16.mxu0 %v2228_v37  ;;  %v1623_v36 = vld [vmem:[%s2800_s3 + $0x68] sm:$0xff]  ;;  %v1622_v37 = vld [vmem:[%s2800_s3 + $0x60] sm:$0xff] }
  0x62   : > { %2026 = vmatprep.subr.bf16.mxu1 %v2229_v38  ;;  %v1621_v38 = vld [vmem:[%s2800_s3 + $0x58] sm:$0xff] }
  0x64   : > { %2005 = vmatpush3.bf16.msra.mxu0 %v2230_v39  ;;  %v1620_v39 = vld [vmem:[%s2800_s3 + $0x50] sm:$0xff] }
  0x65   : > { %2027 = vmatpush3.bf16.msra.mxu1 %v2231_v40  ;;  %2006 = vmatprep.subr.bf16.mxu0 %v2232_v41  ;;  %v1619_v40 = vld [vmem:[%s2800_s3 + $0x48] sm:$0xff]  ;;  %v1618_v41 = vld [vmem:[%s2800_s3 + $0x40] sm:$0xff] }
  0x66   : > { %2028 = vmatprep.subr.bf16.mxu1 %v2233_v42  ;;  %v1617_v42 = vld [vmem:[%s2800_s3 + $0x38] sm:$0xff] }
  0x68   : > { %2007 = vmatpush3.bf16.msra.mxu0 %v2234_v43  ;;  %v1616_v43 = vld [vmem:[%s2800_s3 + $0x30] sm:$0xff] }
  0x69   : > { %2029 = vmatpush3.bf16.msra.mxu1 %v2235_v44  ;;  %2008 = vmatprep.subr.bf16.mxu0 %v2236_v45  ;;  %v1615_v44 = vld [vmem:[%s2800_s3 + $0x28] sm:$0xff]  ;;  %v1614_v45 = vld [vmem:[%s2800_s3 + $0x20] sm:$0xff] }
  0x6a   : > { %2030 = vmatprep.subr.bf16.mxu1 %v2237_v46  ;;  %v1613_v46 = vld [vmem:[%s2800_s3 + $0x18] sm:$0xff] }
  0x6c   : > { %2009 = vmatpush3.bf16.msra.mxu0 %v2238_v47  ;;  %v1612_v47 = vld [vmem:[%s2800_s3 + $0x10] sm:$0xff] }
  0x6d   : > { %2031 = vmatpush3.bf16.msra.mxu1 %v2239_v48  ;;  %2038 = vmatprep.subr.bf16.mxu0 %v2240_v57  ;;  %v1611_v48 = vld [vmem:[%s2800_s3 + $0x8] sm:$0xff] }
  0x6e   : > { %2060 = vmatprep.subr.bf16.mxu1 %v2241_v58 }
  0x6f   : > { %1482 = vmatmul.mubr.bf16.vlgmr.msra.gmra.mxu0 %v250_v55 }
  0x70   : > { %1522 = vmatmul.mubr.bf16.vlgmr.msra.gmra.mxu1 %v252_v56  ;;  %2039 = vmatpush3.bf16.msra.mxu0 %v2242_v59 }
  0x71   : > { %2061 = vmatpush3.bf16.msra.mxu1 %v2243_v60  ;;  %2040 = vmatprep.subr.bf16.mxu0 %v2244_v61 }
  0x72   : > { %2062 = vmatprep.subr.bf16.mxu1 %v2245_v62  ;;  %1561 = vmatprep.mubr.bf16.mxu0 %v255_v28 }
  0x73   : > { %1601 = vmatprep.mubr.bf16.mxu1 %v257_v29 }
  0x74   : > { %2041 = vmatpush3.bf16.msra.mxu0 %v2246_v63 }
  0x75   : > { %2063 = vmatpush3.bf16.msra.mxu1 %v2247_v0  ;;  %2042 = vmatprep.subr.bf16.mxu0 %v2248_v1 }
  0x76   : > { %2064 = vmatprep.subr.bf16.mxu1 %v2249_v2 }
  0x78   : > { %2043 = vmatpush3.bf16.msra.mxu0 %v2250_v3 }
  0x79   : > { %2065 = vmatpush3.bf16.msra.mxu1 %v2251_v4  ;;  %2044 = vmatprep.subr.bf16.mxu0 %v2252_v5 }
  0x7a   : > { %2066 = vmatprep.subr.bf16.mxu1 %v2253_v6 }
  0x7c   : > { %2045 = vmatpush3.bf16.msra.mxu0 %v2254_v7 }
  0x7d   : > { %2067 = vmatpush3.bf16.msra.mxu1 %v2255_v8  ;;  %2046 = vmatprep.subr.bf16.mxu0 %v2256_v9 }
  0x7e   : > { %2068 = vmatprep.subr.bf16.mxu1 %v2257_v10 }
  0x80   : > { %2047 = vmatpush3.bf16.msra.mxu0 %v2258_v11 }
  0x81   : > { %2069 = vmatpush3.bf16.msra.mxu1 %v2259_v12  ;;  %2048 = vmatprep.subr.bf16.mxu0 %v2260_v13 }
  0x82   : > { %2070 = vmatprep.subr.bf16.mxu1 %v2261_v14 }
  0x84   : > { %2049 = vmatpush3.bf16.msra.mxu0 %v2262_v15 }
  0x85   : > { %2071 = vmatpush3.bf16.msra.mxu1 %v2263_v16  ;;  %2050 = vmatprep.subr.bf16.mxu0 %v2264_v17 }
  0x86   : > { %2072 = vmatprep.subr.bf16.mxu1 %v2265_v18 }
  0x88   : > { %2051 = vmatpush3.bf16.msra.mxu0 %v2266_v19 }
  0x89   : > { %2073 = vmatpush3.bf16.msra.mxu1 %v2267_v20  ;;  %2052 = vmatprep.subr.bf16.mxu0 %v2268_v21 }
  0x8a   : > { %2074 = vmatprep.subr.bf16.mxu1 %v2269_v22 }
  0x8c   : > { %2053 = vmatpush3.bf16.msra.mxu0 %v2270_v23 }
  0x8d   : > { %2075 = vmatpush3.bf16.msra.mxu1 %v2271_v24  ;;  %2099 = vmatprep.subr.mxu0 %v2284_v34 }
  0x8f   : > { %1562 = vmatmul.mubr.bf16.vlgmr.msra.gmra.mxu0 %v254_v30 }
  0x90   : > { %1602 = vmatmul.mubr.bf16.vlgmr.msra.gmra.mxu1 %v256_v32  ;;  %2100 = vmatpush3.msra.mxu0 %v1625_v33 }
  0x91   : > { %2101 = vmatprep.subr.mxu0 %v2284_v34  ;;  %2131 = vmatprep.mubr.msk.f32.mxu0 %vm2285_vm0, %v2284_v34 }
  0x92   : > { %2102 = vmatpush3.msra.mxu0 %v1624_v35 }
  0x93   : > { %2103 = vmatprep.subr.mxu0 %v2284_v34 }
  0x94   : > { %2104 = vmatpush3.msra.mxu0 %v1623_v36  ;;  %v1901_v36 = vld [vmem:[#allocation2] ss:$0 sm:$0xff] }
  0x95   : > { %2105 = vmatprep.subr.mxu0 %v2284_v34 }
  0x96   : > { %2106 = vmatpush3.msra.mxu0 %v1622_v37 }
  0x97   : > { %2107 = vmatprep.subr.mxu0 %v2284_v34 }
  0x98   : > { %2108 = vmatpush3.msra.mxu0 %v1621_v38 }
  0x99   : > { %2109 = vmatprep.subr.mxu0 %v2284_v34 }
  0x9a   : > { %2110 = vmatpush3.msra.mxu0 %v1620_v39 }
  0x9b   : > { %2111 = vmatprep.subr.mxu0 %v2284_v34 }
  0x9c   : > { %2112 = vmatpush3.msra.mxu0 %v1619_v40 }
  0x9d   : > { %2113 = vmatprep.subr.mxu0 %v2284_v34 }
  0x9e   : > { %2114 = vmatpush3.msra.mxu0 %v1618_v41 }
  0x9f   : > { %2115 = vmatprep.subr.mxu0 %v2284_v34 }
  0xa0   : > { %2116 = vmatpush3.msra.mxu0 %v1617_v42 }
  0xa1   : > { %2117 = vmatprep.subr.mxu0 %v2284_v34 }
  0xa2   : > { %2118 = vmatpush3.msra.mxu0 %v1616_v43 }
  0xa3   : > { %2119 = vmatprep.subr.mxu0 %v2284_v34 }
  0xa4   : > { %2120 = vmatpush3.msra.mxu0 %v1615_v44 }
  0xa5   : > { %2121 = vmatprep.subr.mxu0 %v2284_v34 }
  0xa6   : > { %2122 = vmatpush3.msra.mxu0 %v1614_v45 }
  0xa7   : > { %2123 = vmatprep.subr.mxu0 %v2284_v34 }
  0xa8   : > { %2124 = vmatpush3.msra.mxu0 %v1613_v46 }
  0xa9   : > { %2125 = vmatprep.subr.mxu0 %v2284_v34 }
  0xaa   : > { %2126 = vmatpush3.msra.mxu0 %v1612_v47 }
  0xab   : > { %2127 = vmatprep.subr.mxu0 %v2284_v34 }
  0xac   : > { %2128 = vmatpush3.msra.mxu0 %v1611_v48 }
  0xad   : > { %2129 = vmatprep.subr.mxu0 %v2284_v34 }
  0xae   : > { %2130 = vmatpush3.msra.mxu0 %v1610_v49 }
  0xef   : > { %v1922_v50 = vpop.f32.mrf.mxu0 }
  0xf0   : > { %v1944_v51 = vpop.f32.mrf.mxu1 }
  0xf1   : > { %v1923_v53 = vpop.f32.mrf.mxu0 }
  0xf2   : > { %v1945_v54 = vpop.f32.mrf.mxu1  ;;  %v1924_v55 = vadd.f32 %v1923_v53, %v1922_v50 }
  0xf3   : > { %v1946_v56 = vadd.f32 %v1945_v54, %v1944_v51  ;;  %v1925_v57 = vpop.f32.mrf.mxu0 }
  0xf4   : > { %v1947_v58 = vpop.f32.mrf.mxu1  ;;  %v1324_v59 = vadd.f32 %v1924_v55, %v1772_v52 }
  0xf5   : > { %v1926_v60 = vpop.f32.mrf.mxu0 }
  0xf6   : > { %v1948_v61 = vpop.f32.mrf.mxu1  ;;  %v1364_v62 = vadd.f32 %v1946_v56, %v1324_v59 }
 0x10f   : > { %v1966_v63 = vpop.f32.mrf.mxu0 }
 0x110   : > { %v1988_v0 = vpop.f32.mrf.mxu1 }
 0x111   : > { %v1967_v1 = vpop.f32.mrf.mxu0 }
 0x112   : > { %v1989_v2 = vpop.f32.mrf.mxu1  ;;  %v1968_v15 = vadd.f32 %v1967_v1, %v1966_v63 }
 0x113   : > { %v1969_v3 = vpop.f32.mrf.mxu0  ;;  %v1990_v17 = vadd.f32 %v1989_v2, %v1988_v0 }
 0x114   : > { %v1991_v4 = vpop.f32.mrf.mxu1  ;;  %v1404_v16 = vadd.f32 %v1968_v15, %v1364_v62 }
 0x115   : > { %v1970_v5 = vpop.f32.mrf.mxu0 }
 0x116   : > { %v1992_v6 = vpop.f32.mrf.mxu1  ;;  %v1444_v19 = vadd.f32 %v1990_v17, %v1404_v16 }
 0x12f   : > { %v2010_v7 = vpop.f32.mrf.mxu0 }
 0x130   : > { %v2032_v8 = vpop.f32.mrf.mxu1 }
 0x131   : > { %v2011_v9 = vpop.f32.mrf.mxu0 }
 0x132   : > { %v2033_v10 = vpop.f32.mrf.mxu1  ;;  %v2012_v18 = vadd.f32 %v2011_v9, %v2010_v7 }
 0x133   : > { %v2013_v11 = vpop.f32.mrf.mxu0  ;;  %v2034_v21 = vadd.f32 %v2033_v10, %v2032_v8 }
 0x134   : > { %v2035_v12 = vpop.f32.mrf.mxu1  ;;  %v1484_v20 = vadd.f32 %v2012_v18, %v1444_v19 }
 0x135   : > { %v2014_v13 = vpop.f32.mrf.mxu0 }
 0x136   : > { %v2036_v14 = vpop.f32.mrf.mxu1  ;;  %v1524_v26 = vadd.f32 %v2034_v21, %v1484_v20 }
 0x14f   : > { %v2054_v22 = vpop.f32.mrf.mxu0 }
 0x150   : > { %v2076_v23 = vpop.f32.mrf.mxu1 }
 0x151   : > { %v2055_v24 = vpop.f32.mrf.mxu0 }
 0x152   : > { %v2077_v25 = vpop.f32.mrf.mxu1  ;;  %v2056_v27 = vadd.f32 %v2055_v24, %v2054_v22 }
 0x153   : > { %v2057_v28 = vpop.f32.mrf.mxu0  ;;  %v2078_v31 = vadd.f32 %v2077_v25, %v2076_v23 }
 0x154   : > { %v2079_v29 = vpop.f32.mrf.mxu1  ;;  %v1564_v30 = vadd.f32 %v2056_v27, %v1524_v26 }
 0x155   : > { %v2058_v32 = vpop.f32.mrf.mxu0 }
 0x156   : > { %v2080_v33 = vpop.f32.mrf.mxu1  ;;  %v1604_v34 = vadd.f32 %v2078_v31, %v1564_v30 }
 0x158   : > { %v1609_v35 = vmax.f32 %v1604_v34, 0.0 }
 0x15a   : > { %2132 = vmatmul.mubr.f32.vlgmr.msra.gmra.mxu0 %v1609_v35 }
 0x21a   : > { %v1699_v37 = vpop.f32.mrf.mxu0 }
 0x21b   : > { %v1700_v38 = vadd.f32 %v1901_v36, %v1699_v37 }
 0x21c   : > { %v2133_v39 = vpop.f32.mrf.mxu0 }
 0x21d   : > { %v1902_v40 = vmul.f32 -1.442695, %v1700_v38 }
 0x21f   : > { %2272 = vpow2.f32 %v1902_v40 }
 0x22c   : > { %v2273_v41 = vpop.eup %2272 }
 0x22d   : > { %v1706_v42 = vadd.f32 1.0, %v2273_v41 }
 0x22f   : > { %2274 = vrcp.f32 %v1706_v42 }
 0x23c   : > { %v2275_v43 = vpop.eup %2274 }
 0x23d   : > { %1710 = vst.msk [vmem:[%s224_s13] sm:$0xff] %vm1709_vm1, %v2275_v43 }
 0x23e PF: > { %s17_s20 = sadd.s32 1, %s2282_s20  }
 0x23f   : > { %p14_p4 = scmp.ge.s32.totalorder %s17_s20, 4  }
 0x241   :  { %16 = sbr.rel (!%p14_p4) target bundleno = 3 (0x3), region = 70 }

</bundles_post_ra>
